<compile_context>
chip_gen: v5e
topology: v5e:2x2
jax: 0.10.0
libtpu: 0.0.40
codegen_flags: <defaults>
</compile_context>

<pallas_src>
import jax
import jax.numpy as jnp
from jax.experimental import pallas as pl
from jax.experimental.pallas import tpu as pltpu


def _round_up(x, m):
    return ((x + m - 1) // m) * m


def _cdiv(a, b):
    return (a + b - 1) // b


def decoder_kernel(z_ref,
                   w1_ref, b1_ref,
                   w2_ref, b2_ref,
                   w3_ref, b3_ref,
                   w4_ref, b4_ref,
                   out_ref):
    bf16 = jnp.bfloat16

    # Layer 1: (TM, K) @ (K, 128) + (1, 128) -> ReLU
    h = jnp.dot(z_ref[...].astype(bf16), w1_ref[...],
                preferred_element_type=jnp.float32)
    h = jnp.maximum(h + b1_ref[...], 0.0).astype(bf16)

    # Layer 2: (TM, 128) @ (128, 256) + (1, 256) -> ReLU
    h = jnp.dot(h, w2_ref[...], preferred_element_type=jnp.float32)
    h = jnp.maximum(h + b2_ref[...], 0.0).astype(bf16)

    # Layer 3: (TM, 256) @ (256, 512) + (1, 512) -> ReLU
    h = jnp.dot(h, w3_ref[...], preferred_element_type=jnp.float32)
    h = jnp.maximum(h + b3_ref[...], 0.0).astype(bf16)

    # Layer 4: (TM, 512) @ (512, OUT) + (1, OUT)   (no activation)
    h = jnp.dot(h, w4_ref[...], preferred_element_type=jnp.float32)
    out_ref[...] = (h + b4_ref[...]).astype(out_ref.dtype)


def decoder_forward(z, packed, *, tm_max=2048):
    """z: (B, latent_dim); packed: dict from pack_decoder_params (bf16 weights,
    f32 (1, dout) biases).  Returns (B, output_dim) float32."""
    B, K = z.shape
    out_dim = packed["w4"].shape[1]

    # --- batch tiling -------------------------------------------------------
    B8 = _round_up(B, 8)
    n_tiles = _cdiv(B8, tm_max)
    if B8 >= 16:
        n_tiles = max(n_tiles, 2)          # >=2 grid steps -> both v7x TCs used
    TM = _round_up(_cdiv(B8, n_tiles), 8)  # keeps over-padding to a few rows
    n_tiles = _cdiv(B8, TM)
    B_PAD = TM * n_tiles

    z = z.astype(jnp.float32)
    if B_PAD != B:
        z = jnp.zeros((B_PAD, K), jnp.float32).at[:B].set(z)

    # --- block specs --------------------------------------------------------
    def resident(shape):
        # Same block every grid step -> weights/biases stay resident in VMEM.
        return pl.BlockSpec(shape, lambda i: (0, 0))

    layer_dims = [(K, 128), (128, 256), (256, 512), (512, out_dim)]
    in_specs = [pl.BlockSpec((TM, K), lambda i: (i, 0))]   # z tile (unpadded K)
    for din, dout in layer_dims:
        in_specs.append(resident((din, dout)))             # weight (full array)
        in_specs.append(resident((1, dout)))               # bias   (full array)

    out_spec = pl.BlockSpec((TM, out_dim), lambda i: (i, 0))

    out = pl.pallas_call(
        decoder_kernel,
        out_shape=jax.ShapeDtypeStruct((B_PAD, out_dim), jnp.float32),
        grid=(n_tiles,),
        in_specs=in_specs,
        out_specs=out_spec,
        compiler_params=pltpu.CompilerParams(
            dimension_semantics=("parallel",),   # shard batch tiles on v7x
            vmem_limit_bytes=48 * 1024 * 1024,   # safe on v7x (64 MiB physical)
        ),
    )(z,
      packed["w1"], packed["b1"],
      packed["w2"], packed["b2"],
      packed["w3"], packed["b3"],
      packed["w4"], packed["b4"])

    return out[:B] if B_PAD != B else out


def init_decoder_params(key, latent_dim, output_dim):
    """Deterministic synthetic init matching nn.Linear shapes (stored transposed),
    in float32 (reference precision)."""
    dims = [(latent_dim, 128), (128, 256), (256, 512), (512, output_dim)]
    params = {}
    for i, (din, dout) in enumerate(dims, start=1):
        key, kw, kb = jax.random.split(key, 3)
        bound = 1.0 / jnp.sqrt(jnp.float32(din))  # PyTorch default Linear scale
        params[f"w{i}"] = jax.random.uniform(
            kw, (din, dout), jnp.float32, -bound, bound)
        params[f"b{i}"] = jax.random.uniform(
            kb, (1, dout), jnp.float32, -bound, bound)
    return params


def pack_decoder_params(params):
    """One-time packing for the kernel: bf16 weights, f32 biases."""
    packed = {}
    for i in range(1, 5):
        packed[f"w{i}"] = params[f"w{i}"].astype(jnp.bfloat16)
        packed[f"b{i}"] = params[f"b{i}"].astype(jnp.float32)
    return packed


def decoder_ref_f32(z, params):
    """Plain-JAX float32 reference (matches the PyTorch module semantics)."""
    h = jnp.maximum(z @ params["w1"] + params["b1"], 0.0)
    h = jnp.maximum(h @ params["w2"] + params["b2"], 0.0)
    h = jnp.maximum(h @ params["w3"] + params["b3"], 0.0)
    return h @ params["w4"] + params["b4"]


def decoder_ref_bf16(z, params):
    """Reference that mirrors the kernel's bf16-operand / f32-accumulate math."""
    bf = jnp.bfloat16

    def layer(x, w, b, act):
        y = jnp.dot(x.astype(bf), w.astype(bf),
                    preferred_element_type=jnp.float32) + b
        return jnp.maximum(y, 0.0) if act else y

    h = layer(z, params["w1"], params["b1"], True)
    h = layer(h, params["w2"], params["b2"], True)
    h = layer(h, params["w3"], params["b3"], True)
    return layer(h, params["w4"], params["b4"], False)


if __name__ == "__main__":
    latent_dim = 10
    output_dim = 64
    batch = 8

    key = jax.random.PRNGKey(0)
    key, kz = jax.random.split(key)
    z = jax.random.normal(kz, (batch, latent_dim), jnp.float32)

    params = init_decoder_params(key, latent_dim, output_dim)
    packed = pack_decoder_params(params)   # hoisted: pad/cast once, reuse per call

    out = decoder_forward(z, packed)
    out = jax.block_until_ready(out)
    assert out.shape == (batch, output_dim)

    # Tight check against a reference mirroring the kernel's bf16/f32 math.
    ref_bf16 = decoder_ref_bf16(z, params)
    assert jnp.allclose(out, ref_bf16, atol=2e-3, rtol=2e-3)

    # Loose sanity check against the exact float32 module semantics
    # (bf16 MXU operands deviate slightly from pure f32, by design).
    ref_f32 = decoder_ref_f32(z, params)
    assert jnp.allclose(out, ref_f32, atol=3e-2, rtol=3e-2)

    print("KERNEL_OK")
</pallas_src>

<mosaic_0001>
module attributes {stable_mosaic.version = 11 : i64} {
  func.func @decoder_kernel(%arg0: i32, %arg1: memref<8x10xf32, #tpu.memory_space<vmem>>, %arg2: memref<10x128xbf16, #tpu.memory_space<vmem>>, %arg3: memref<1x128xf32, #tpu.memory_space<vmem>>, %arg4: memref<128x256xbf16, #tpu.memory_space<vmem>>, %arg5: memref<1x256xf32, #tpu.memory_space<vmem>>, %arg6: memref<256x512xbf16, #tpu.memory_space<vmem>>, %arg7: memref<1x512xf32, #tpu.memory_space<vmem>>, %arg8: memref<512x64xbf16, #tpu.memory_space<vmem>>, %arg9: memref<1x64xf32, #tpu.memory_space<vmem>>, %arg10: memref<8x64xf32, #tpu.memory_space<vmem>>) attributes {dimension_semantics = [#tpu.dimension_semantics<parallel>], iteration_bounds = array<i64: 1>, scalar_prefetch = 0 : i64, scratch_operands = 0 : i64, tpu.core_type = #tpu.core_type<tc>, window_params = [{transform_indices = @transform_0, window_bounds = array<i64: 8, 10>}, {pipeline_mode = #tpu.pipeline_mode<synchronous>, transform_indices = @transform_1, window_bounds = array<i64: 10, 128>}, {pipeline_mode = #tpu.pipeline_mode<synchronous>, transform_indices = @transform_2, window_bounds = array<i64: 1, 128>}, {pipeline_mode = #tpu.pipeline_mode<synchronous>, transform_indices = @transform_3, window_bounds = array<i64: 128, 256>}, {pipeline_mode = #tpu.pipeline_mode<synchronous>, transform_indices = @transform_4, window_bounds = array<i64: 1, 256>}, {pipeline_mode = #tpu.pipeline_mode<synchronous>, transform_indices = @transform_5, window_bounds = array<i64: 256, 512>}, {pipeline_mode = #tpu.pipeline_mode<synchronous>, transform_indices = @transform_6, window_bounds = array<i64: 1, 512>}, {pipeline_mode = #tpu.pipeline_mode<synchronous>, transform_indices = @transform_7, window_bounds = array<i64: 512, 64>}, {pipeline_mode = #tpu.pipeline_mode<synchronous>, transform_indices = @transform_8, window_bounds = array<i64: 1, 64>}, {transform_indices = @transform_9, window_bounds = array<i64: 8, 64>}]} {
    %c0 = arith.constant 0 : index
    %c0_0 = arith.constant 0 : index
    %0 = vector.load %arg1[%c0, %c0_0] : memref<8x10xf32, #tpu.memory_space<vmem>>, vector<8x10xf32>
    %1 = arith.truncf %0 : vector<8x10xf32> to vector<8x10xbf16>
    %c0_1 = arith.constant 0 : index
    %c0_2 = arith.constant 0 : index
    %2 = vector.load %arg2[%c0_1, %c0_2] : memref<10x128xbf16, #tpu.memory_space<vmem>>, vector<10x128xbf16>
    %cst = arith.constant dense<0.000000e+00> : vector<8x128xf32>
    %3 = tpu.matmul %1, %2, %cst {dimension_numbers = #tpu.dot_dimension_numbers<[1], [0], [0], [1], [0, 0, 1, 1], [], []>} : vector<8x10xbf16>, vector<10x128xbf16>, vector<8x128xf32> -> vector<8x128xf32>
    %c0_3 = arith.constant 0 : index
    %c0_4 = arith.constant 0 : index
    %4 = vector.load %arg3[%c0_3, %c0_4] : memref<1x128xf32, #tpu.memory_space<vmem>>, vector<1x128xf32>
    %5 = vector.broadcast %4 : vector<1x128xf32> to vector<8x128xf32>
    %6 = arith.addf %3, %5 : vector<8x128xf32>
    %cst_5 = arith.constant 0.000000e+00 : f32
    %7 = vector.broadcast %cst_5 : f32 to vector<8x128xf32>
    %8 = arith.maximumf %6, %7 : vector<8x128xf32>
    %9 = arith.truncf %8 : vector<8x128xf32> to vector<8x128xbf16>
    %c0_6 = arith.constant 0 : index
    %c0_7 = arith.constant 0 : index
    %10 = vector.load %arg4[%c0_6, %c0_7] : memref<128x256xbf16, #tpu.memory_space<vmem>>, vector<128x256xbf16>
    %cst_8 = arith.constant dense<0.000000e+00> : vector<8x256xf32>
    %11 = tpu.matmul %9, %10, %cst_8 {dimension_numbers = #tpu.dot_dimension_numbers<[1], [0], [0], [1], [0, 0, 1, 1], [], []>} : vector<8x128xbf16>, vector<128x256xbf16>, vector<8x256xf32> -> vector<8x256xf32>
    %c0_9 = arith.constant 0 : index
    %c0_10 = arith.constant 0 : index
    %12 = vector.load %arg5[%c0_9, %c0_10] : memref<1x256xf32, #tpu.memory_space<vmem>>, vector<1x256xf32>
    %13 = vector.broadcast %12 : vector<1x256xf32> to vector<8x256xf32>
    %14 = arith.addf %11, %13 : vector<8x256xf32>
    %cst_11 = arith.constant 0.000000e+00 : f32
    %15 = vector.broadcast %cst_11 : f32 to vector<8x256xf32>
    %16 = arith.maximumf %14, %15 : vector<8x256xf32>
    %17 = arith.truncf %16 : vector<8x256xf32> to vector<8x256xbf16>
    %c0_12 = arith.constant 0 : index
    %c0_13 = arith.constant 0 : index
    %18 = vector.load %arg6[%c0_12, %c0_13] : memref<256x512xbf16, #tpu.memory_space<vmem>>, vector<256x512xbf16>
    %cst_14 = arith.constant dense<0.000000e+00> : vector<8x512xf32>
    %19 = tpu.matmul %17, %18, %cst_14 {dimension_numbers = #tpu.dot_dimension_numbers<[1], [0], [0], [1], [0, 0, 1, 1], [], []>} : vector<8x256xbf16>, vector<256x512xbf16>, vector<8x512xf32> -> vector<8x512xf32>
    %c0_15 = arith.constant 0 : index
    %c0_16 = arith.constant 0 : index
    %20 = vector.load %arg7[%c0_15, %c0_16] : memref<1x512xf32, #tpu.memory_space<vmem>>, vector<1x512xf32>
    %21 = vector.broadcast %20 : vector<1x512xf32> to vector<8x512xf32>
    %22 = arith.addf %19, %21 : vector<8x512xf32>
    %cst_17 = arith.constant 0.000000e+00 : f32
    %23 = vector.broadcast %cst_17 : f32 to vector<8x512xf32>
    %24 = arith.maximumf %22, %23 : vector<8x512xf32>
    %25 = arith.truncf %24 : vector<8x512xf32> to vector<8x512xbf16>
    %c0_18 = arith.constant 0 : index
    %c0_19 = arith.constant 0 : index
    %26 = vector.load %arg8[%c0_18, %c0_19] : memref<512x64xbf16, #tpu.memory_space<vmem>>, vector<512x64xbf16>
    %cst_20 = arith.constant dense<0.000000e+00> : vector<8x64xf32>
    %27 = tpu.matmul %25, %26, %cst_20 {dimension_numbers = #tpu.dot_dimension_numbers<[1], [0], [0], [1], [0, 0, 1, 1], [], []>} : vector<8x512xbf16>, vector<512x64xbf16>, vector<8x64xf32> -> vector<8x64xf32>
    %c0_21 = arith.constant 0 : index
    %c0_22 = arith.constant 0 : index
    %28 = vector.load %arg9[%c0_21, %c0_22] : memref<1x64xf32, #tpu.memory_space<vmem>>, vector<1x64xf32>
    %29 = vector.broadcast %28 : vector<1x64xf32> to vector<8x64xf32>
    %30 = arith.addf %27, %29 : vector<8x64xf32>
    %c0_23 = arith.constant 0 : index
    %c0_24 = arith.constant 0 : index
    %31 = vector.load %arg10[%c0_23, %c0_24] : memref<8x64xf32, #tpu.memory_space<vmem>>, vector<8x64xf32>
    tpu.vector_store %arg10[%c0_23, %c0_24], %30 {strides = array<i32>} : memref<8x64xf32, #tpu.memory_space<vmem>>, vector<8x64xf32>,
    return
  }
  func.func @transform_0(%arg0: i32) -> (i32, i32) {
    %c0_i32 = arith.constant 0 : i32
    %c0_i32_0 = arith.constant 0 : i32
    return %arg0, %c0_i32 : i32, i32
  }
  func.func @transform_1(%arg0: i32) -> (i32, i32) {
    %c0_i32 = arith.constant 0 : i32
    %c0_i32_0 = arith.constant 0 : i32
    %c0_i32_1 = arith.constant 0 : i32
    return %c0_i32, %c0_i32_0 : i32, i32
  }
  func.func @transform_2(%arg0: i32) -> (i32, i32) {
    %c0_i32 = arith.constant 0 : i32
    %c0_i32_0 = arith.constant 0 : i32
    %c0_i32_1 = arith.constant 0 : i32
    return %c0_i32, %c0_i32_0 : i32, i32
  }
  func.func @transform_3(%arg0: i32) -> (i32, i32) {
    %c0_i32 = arith.constant 0 : i32
    %c0_i32_0 = arith.constant 0 : i32
    %c0_i32_1 = arith.constant 0 : i32
    return %c0_i32, %c0_i32_0 : i32, i32
  }
  func.func @transform_4(%arg0: i32) -> (i32, i32) {
    %c0_i32 = arith.constant 0 : i32
    %c0_i32_0 = arith.constant 0 : i32
    %c0_i32_1 = arith.constant 0 : i32
    return %c0_i32, %c0_i32_0 : i32, i32
  }
  func.func @transform_5(%arg0: i32) -> (i32, i32) {
    %c0_i32 = arith.constant 0 : i32
    %c0_i32_0 = arith.constant 0 : i32
    %c0_i32_1 = arith.constant 0 : i32
    return %c0_i32, %c0_i32_0 : i32, i32
  }
  func.func @transform_6(%arg0: i32) -> (i32, i32) {
    %c0_i32 = arith.constant 0 : i32
    %c0_i32_0 = arith.constant 0 : i32
    %c0_i32_1 = arith.constant 0 : i32
    return %c0_i32, %c0_i32_0 : i32, i32
  }
  func.func @transform_7(%arg0: i32) -> (i32, i32) {
    %c0_i32 = arith.constant 0 : i32
    %c0_i32_0 = arith.constant 0 : i32
    %c0_i32_1 = arith.constant 0 : i32
    return %c0_i32, %c0_i32_0 : i32, i32
  }
  func.func @transform_8(%arg0: i32) -> (i32, i32) {
    %c0_i32 = arith.constant 0 : i32
    %c0_i32_0 = arith.constant 0 : i32
    %c0_i32_1 = arith.constant 0 : i32
    return %c0_i32, %c0_i32_0 : i32, i32
  }
  func.func @transform_9(%arg0: i32) -> (i32, i32) {
    %c0_i32 = arith.constant 0 : i32
    %c0_i32_0 = arith.constant 0 : i32
    return %arg0, %c0_i32 : i32, i32
  }
}

</mosaic_0001>

<bundles_post_ra>
// kernel: tpu_custom_call.1
= control target key start
LH: loop header
LB: loop body
LE: loop exit
PB: predicated region body
PF: predicated region fallthrough
CT: control target
= control target key end

     0   :  { %14 = vsyncpa [#allocation3], 0  ;;  %s1952_s0 = inlined_call_operand.vmem [shape: f32[8,10], index: 0, kind: input, shape index: {}]   ;;  %s1953_s1 = inlined_call_operand.vmem [shape: bf16[10,128], index: 1, kind: input, shape index: {}]   ;;  %s1954_s2 = inlined_call_operand.vmem [shape: f32[1,128], index: 2, kind: input, shape index: {}]   ;;  %s1955_s3 = inlined_call_operand.vmem [shape: bf16[128,256], index: 3, kind: input, shape index: {}]   ;;  %s1956_s4 = inlined_call_operand.vmem [shape: f32[1,256], index: 4, kind: input, shape index: {}]   ;;  %s1957_s5 = inlined_call_operand.hbm [shape: bf16[256,512], index: 5, kind: input, shape index: {}]   ;;  %s1958_s6 = inlined_call_operand.vmem [shape: f32[1,512], index: 6, kind: input, shape index: {}]   ;;  %s1959_s7 = inlined_call_operand.vmem [shape: bf16[512,64], index: 7, kind: input, shape index: {}]   ;;  %s1960_s8 = inlined_call_operand.vmem [shape: f32[1,64], index: 8, kind: input, shape index: {}]   ;;  %s1961_s9 = inlined_call_operand.hbm [shape: f32[8,64], index: 9, kind: output, shape index: {}]  }
   0x1   :  { %15 = vsyncpa [#allocation4], 0  ;;  %s30_s11 = sshll.u32 %s1957_s5, 4  ;;  %s1679_s12 = smov [#allocation2]   ;;  %s31_s11 = int_to_ptr.hbm [resolvable:$true] %s30_s11 }
   0x2   :  { %s32_s13 = sshll.u32 %s1679_s12, 4  ;;  %s1680_s14 = smov 256   ;;  %s33_s13 = int_to_ptr.vmem [resolvable:$true] %s32_s13 }
   0x3   :  { %s1681_s15 = smov 16  }
   0x4   :  { %38 = dma.hbm_to_vmem [thread:$0]  %s31_s11, 8192, %s33_s13, [#allocation3], %s1680_s14, %s1680_s14, %s1681_s15  }
   0x5   :  { %1675 = dma.done.wait [#allocation3], 8192  }
   0x6   :  { %1676 = vsyncadd [#allocation3], 4294959104  ;;  %v1057_v0 = vld [vmem:[%s1953_s1] sm:$0xf]  ;;  %v1508_v1 = vld [vmem:[%s1953_s1] sm:$0x10] }
   0x7   :  { %vm67_vm0 = vcmask 1044480   ;;  %v50_v2 = vld [vmem:[%s1952_s0] sm:$0xff]  ;;  %v1058_v3 = vor.u32 %v1508_v1, %v1057_v0  ;;  %v1118_v4 = vld [vmem:[%s1955_s3 + $0x70] sm:$0xf]  ;;  %v1524_v5 = vld [vmem:[%s1955_s3 + $0x74] sm:$0xf0] }
   0x8   :  { %v1523_v6 = vld [vmem:[%s1955_s3 + $0x74] sm:$0xf]  ;;  %v1119_v7 = vor.u32 %v1524_v5, %v1118_v4  ;;  %v1120_v8 = vld [vmem:[%s1955_s3 + $0x78] sm:$0xf0]  ;;  %v1110_v9 = vld [vmem:[%s1955_s3 + $0x60] sm:$0xf]  ;;  %v51_v12 = vpack.c.bf16 %v50_v2, %v50_v2 }
   0x9   :  { %v1522_v10 = vld [vmem:[%s1955_s3 + $0x64] sm:$0xf0]  ;;  %v69_v11 = vsel %vm67_vm0, %v1058_v3, 0  ;;  %v1123_v13 = vor.u32 %v1523_v6, %v1120_v8  ;;  %v1521_v14 = vld [vmem:[%s1955_s3 + $0x64] sm:$0xf]  ;;  %vm63_vm1 = vcmask 80896  }
   0xa   :  { %v1112_v15 = vld [vmem:[%s1955_s3 + $0x68] sm:$0xf0]  ;;  %78 = vmatpush.bf16.msra.mxu0 %v69_v11  ;;  %188 = vmatpush.bf16.msra.mxu1 %v1119_v7  ;;  %v1111_v16 = vor.u32 %v1522_v10, %v1110_v9  ;;  %v1102_v18 = vld [vmem:[%s1955_s3 + $0x50] sm:$0xf]  ;;  %v1520_v19 = vld [vmem:[%s1955_s3 + $0x54] sm:$0xf0] }
   0xb   :  { %201 = vmatpush.bf16.msra.mxu2 %v1123_v13  ;;  %v1115_v17 = vor.u32 %v1521_v14, %v1112_v15  ;;  %v1519_v20 = vld [vmem:[%s1955_s3 + $0x54] sm:$0xf]  ;;  %v1104_v21 = vld [vmem:[%s1955_s3 + $0x58] sm:$0xf0]  ;;  %v1103_v22 = vor.u32 %v1520_v19, %v1102_v18  ;;  %v1094_v24 = vld [vmem:[%s1955_s3 + $0x40] sm:$0xf] }
   0xc   :  { %v1107_v23 = vor.u32 %v1519_v20, %v1104_v21  ;;  %v1518_v25 = vld [vmem:[%s1955_s3 + $0x44] sm:$0xf0]  ;;  %v1517_v26 = vld [vmem:[%s1955_s3 + $0x44] sm:$0xf]  ;;  %v1096_v27 = vld [vmem:[%s1955_s3 + $0x48] sm:$0xf0] }
   0xd   :  { %1059 = vmatmul.msk.bf16.vlgmr.msra.gmra.mxu0 %vm63_vm1, %v51_v12  ;;  %v1095_v28 = vor.u32 %v1518_v25, %v1094_v24  ;;  %v1099_v29 = vor.u32 %v1517_v26, %v1096_v27  ;;  %v1086_v30 = vld [vmem:[%s1955_s3 + $0x30] sm:$0xf]  ;;  %v1516_v31 = vld [vmem:[%s1955_s3 + $0x34] sm:$0xf0]  ;;  %v1515_v32 = vld [vmem:[%s1955_s3 + $0x34] sm:$0xf] }
   0xe   :  { %189 = vmatpush.bf16.msra.mxu1 %v1111_v16  ;;  %v1088_v33 = vld [vmem:[%s1955_s3 + $0x38] sm:$0xf0]  ;;  %v1087_v34 = vor.u32 %v1516_v31, %v1086_v30  ;;  %v1078_v36 = vld [vmem:[%s1955_s3 + $0x20] sm:$0xf]  ;;  %v1514_v37 = vld [vmem:[%s1955_s3 + $0x24] sm:$0xf0] }
   0xf   :  { %202 = vmatpush.bf16.msra.mxu2 %v1115_v17  ;;  %v1091_v35 = vor.u32 %v1515_v32, %v1088_v33  ;;  %v1513_v38 = vld [vmem:[%s1955_s3 + $0x24] sm:$0xf]  ;;  %v1080_v39 = vld [vmem:[%s1955_s3 + $0x28] sm:$0xf0]  ;;  %v1079_v40 = vor.u32 %v1514_v37, %v1078_v36  ;;  %v1070_v42 = vld [vmem:[%s1955_s3 + $0x10] sm:$0xf] }
  0x10   :  { %v1083_v41 = vor.u32 %v1513_v38, %v1080_v39  ;;  %v1512_v43 = vld [vmem:[%s1955_s3 + $0x14] sm:$0xf0]  ;;  %v1511_v44 = vld [vmem:[%s1955_s3 + $0x14] sm:$0xf]  ;;  %v1072_v46 = vld [vmem:[%s1955_s3 + $0x18] sm:$0xf0] }
  0x11   :  { %v1071_v45 = vor.u32 %v1512_v43, %v1070_v42  ;;  %v1075_v47 = vor.u32 %v1511_v44, %v1072_v46  ;;  %v1062_v48 = vld [vmem:[%s1955_s3] sm:$0xf]  ;;  %v1510_v49 = vld [vmem:[%s1955_s3 + $0x4] sm:$0xf0]  ;;  %v1509_v50 = vld [vmem:[%s1955_s3 + $0x4] sm:$0xf] }
  0x12   :  { %190 = vmatpush.bf16.msra.mxu1 %v1103_v22  ;;  %v1063_v51 = vor.u32 %v1510_v49, %v1062_v48  ;;  %v1064_v52 = vld [vmem:[%s1955_s3 + $0x8] sm:$0xf0]  ;;  %v1238_v54 = vld [vmem:[#allocation2 + $0xe0] sm:$0xf]  ;;  %v1555_v55 = vld [vmem:[#allocation2 + $0xec] sm:$0xf0] }
  0x13   :  { %203 = vmatpush.bf16.msra.mxu2 %v1107_v23  ;;  %v1067_v53 = vor.u32 %v1509_v50, %v1064_v52  ;;  %v1553_v56 = vld [vmem:[#allocation2 + $0xe4] sm:$0xf]  ;;  %v1239_v57 = vor.u32 %v1555_v55, %v1238_v54  ;;  %v1240_v58 = vld [vmem:[#allocation2 + $0xf0] sm:$0xf0]  ;;  %v1222_v59 = vld [vmem:[#allocation2 + $0xc0] sm:$0xf] }
  0x14   :  { %v1551_v60 = vld [vmem:[#allocation2 + $0xcc] sm:$0xf0]  ;;  %v1243_v61 = vor.u32 %v1553_v56, %v1240_v58  ;;  %v1549_v62 = vld [vmem:[#allocation2 + $0xc4] sm:$0xf]  ;;  %v1224_v63 = vld [vmem:[#allocation2 + $0xd0] sm:$0xf0] }
  0x15   :  { %v1366_v0 = vld [vmem:[#allocation2 + $0x1e0] sm:$0xf]  ;;  %612 = vmatpush.bf16.msra.mxu3 %v1239_v57  ;;  %v1223_v1 = vor.u32 %v1551_v60, %v1222_v59  ;;  %v1587_v2 = vld [vmem:[#allocation2 + $0x1ec] sm:$0xf0]  ;;  %v1585_v3 = vld [vmem:[#allocation2 + $0x1e4] sm:$0xf]  ;;  %v1227_v5 = vor.u32 %v1549_v62, %v1224_v63 }
  0x16   :  { %191 = vmatpush.bf16.msra.mxu1 %v1095_v28  ;;  %v1368_v4 = vld [vmem:[#allocation2 + $0x1f0] sm:$0xf0]  ;;  %v1367_v6 = vor.u32 %v1587_v2, %v1366_v0  ;;  %v1206_v8 = vld [vmem:[#allocation2 + $0xa0] sm:$0xf]  ;;  %v1547_v9 = vld [vmem:[#allocation2 + $0xac] sm:$0xf0] }
  0x17   :  { %204 = vmatpush.bf16.msra.mxu2 %v1099_v29  ;;  %v1371_v7 = vor.u32 %v1585_v3, %v1368_v4  ;;  %v1545_v10 = vld [vmem:[#allocation2 + $0xa4] sm:$0xf]  ;;  %v1208_v11 = vld [vmem:[#allocation2 + $0xb0] sm:$0xf0]  ;;  %v1350_v12 = vld [vmem:[#allocation2 + $0x1c0] sm:$0xf]  ;;  %v1207_v17 = vor.u32 %v1547_v9, %v1206_v8 }
  0x18   :  { %v1583_v13 = vld [vmem:[#allocation2 + $0x1cc] sm:$0xf0]  ;;  %625 = vmatpush.bf16.msrb.mxu0 %v1367_v6  ;;  %v1581_v15 = vld [vmem:[#allocation2 + $0x1c4] sm:$0xf]  ;;  %v1352_v16 = vld [vmem:[#allocation2 + $0x1d0] sm:$0xf0]  ;;  %v1211_v21 = vor.u32 %v1545_v10, %v1208_v11 }
  0x19   :  { %v1351_v14 = vor.u32 %v1583_v13, %v1350_v12  ;;  %613 = vmatpush.bf16.msra.mxu3 %v1223_v1  ;;  %v1355_v18 = vor.u32 %v1581_v15, %v1352_v16  ;;  %v1190_v19 = vld [vmem:[#allocation2 + $0x80] sm:$0xf]  ;;  %v1543_v20 = vld [vmem:[#allocation2 + $0x8c] sm:$0xf0]  ;;  %v1577_v24 = vld [vmem:[#allocation2 + $0x1a4] sm:$0xf] }
  0x1a   :  { %192 = vmatpush.bf16.msra.mxu1 %v1087_v34  ;;  %v1334_v22 = vld [vmem:[#allocation2 + $0x1a0] sm:$0xf]  ;;  %v1579_v23 = vld [vmem:[#allocation2 + $0x1ac] sm:$0xf0]  ;;  %v1541_v25 = vld [vmem:[#allocation2 + $0x84] sm:$0xf]  ;;  %v1191_v31 = vor.u32 %v1543_v20, %v1190_v19 }
  0x1b   :  { %205 = vmatpush.bf16.msra.mxu2 %v1091_v35  ;;  %v1192_v26 = vld [vmem:[#allocation2 + $0x90] sm:$0xf0]  ;;  %v1335_v28 = vor.u32 %v1579_v23, %v1334_v22  ;;  %v1318_v30 = vld [vmem:[#allocation2 + $0x180] sm:$0xf]  ;;  %v1575_v32 = vld [vmem:[#allocation2 + $0x18c] sm:$0xf0] }
  0x1c   :  { %v1336_v27 = vld [vmem:[#allocation2 + $0x1b0] sm:$0xf0]  ;;  %626 = vmatpush.bf16.msrb.mxu0 %v1351_v14  ;;  %v1573_v33 = vld [vmem:[#allocation2 + $0x184] sm:$0xf]  ;;  %v1195_v35 = vor.u32 %v1541_v25, %v1192_v26  ;;  %v1174_v36 = vld [vmem:[#allocation2 + $0x60] sm:$0xf] }
  0x1d   :  { %v1339_v29 = vor.u32 %v1577_v24, %v1336_v27  ;;  %614 = vmatpush.bf16.msra.mxu3 %v1207_v17  ;;  %v1320_v34 = vld [vmem:[#allocation2 + $0x190] sm:$0xf0]  ;;  %v1539_v37 = vld [vmem:[#allocation2 + $0x6c] sm:$0xf0]  ;;  %v1537_v38 = vld [vmem:[#allocation2 + $0x64] sm:$0xf] }
  0x1e   :  { %193 = vmatpush.bf16.msra.mxu1 %v1079_v40  ;;  %v1176_v39 = vld [vmem:[#allocation2 + $0x70] sm:$0xf0]  ;;  %v1319_v40 = vor.u32 %v1575_v32, %v1318_v30  ;;  %v1302_v42 = vld [vmem:[#allocation2 + $0x160] sm:$0xf]  ;;  %v1175_v43 = vor.u32 %v1539_v37, %v1174_v36  ;;  %v1571_v44 = vld [vmem:[#allocation2 + $0x16c] sm:$0xf0] }
  0x1f   :  { %206 = vmatpush.bf16.msra.mxu2 %v1083_v41  ;;  %v1323_v41 = vor.u32 %v1573_v33, %v1320_v34  ;;  %v1304_v46 = vld [vmem:[#allocation2 + $0x170] sm:$0xf0]  ;;  %v1158_v48 = vld [vmem:[#allocation2 + $0x40] sm:$0xf]  ;;  %v1535_v49 = vld [vmem:[#allocation2 + $0x4c] sm:$0xf0]  ;;  %v1303_v52 = vor.u32 %v1571_v44, %v1302_v42 }
  0x20   :  { %627 = vmatpush.bf16.msrb.mxu0 %v1335_v28  ;;  %v1533_v50 = vld [vmem:[#allocation2 + $0x44] sm:$0xf]  ;;  %v1286_v54 = vld [vmem:[#allocation2 + $0x140] sm:$0xf]  ;;  %v1159_v55 = vor.u32 %v1535_v49, %v1158_v48  ;;  %v1567_v56 = vld [vmem:[#allocation2 + $0x14c] sm:$0xf0] }
  0x21   :  { %615 = vmatpush.bf16.msra.mxu3 %v1191_v31  ;;  %v1565_v57 = vld [vmem:[#allocation2 + $0x144] sm:$0xf]  ;;  %v1288_v58 = vld [vmem:[#allocation2 + $0x150] sm:$0xf0]  ;;  %v1142_v60 = vld [vmem:[#allocation2 + $0x20] sm:$0xf]  ;;  %v1287_v1 = vor.u32 %v1567_v56, %v1286_v54 }
  0x22   :  { %194 = vmatpush.bf16.msra.mxu1 %v1071_v45  ;;  %v1569_v45 = vld [vmem:[#allocation2 + $0x164] sm:$0xf]  ;;  %v1625_v62 = vld [vmem:[%s1954_s2] ss:$0 sm:$0xff]  ;;  %v1144_v0 = vld [vmem:[#allocation2 + $0x30] sm:$0xf0]  ;;  %v1291_v2 = vor.u32 %v1565_v57, %v1288_v58 }
  0x23   :  { %207 = vmatpush.bf16.msra.mxu2 %v1075_v47  ;;  %v1179_v47 = vor.u32 %v1537_v38, %v1176_v39  ;;  %v1529_v63 = vld [vmem:[#allocation2 + $0x24] sm:$0xf]  ;;  %v1270_v3 = vld [vmem:[#allocation2 + $0x120] sm:$0xf]  ;;  %v1527_v6 = vld [vmem:[#allocation2 + $0xc] sm:$0xf0] }
  0x24   :  { %628 = vmatpush.bf16.msrb.mxu0 %v1319_v40  ;;  %v1561_v8 = vld [vmem:[#allocation2 + $0x124] sm:$0xf]  ;;  %v1272_v9 = vld [vmem:[#allocation2 + $0x130] sm:$0xf0]  ;;  %v1147_v11 = vor.u32 %v1529_v63, %v1144_v0  ;;  %v1246_v14 = vld [vmem:[#allocation2 + $0xe8] sm:$0xf] }
  0x25   :  { %616 = vmatpush.bf16.msra.mxu3 %v1175_v43  ;;  %v1525_v12 = vld [vmem:[#allocation2 + $0x4] sm:$0xf]  ;;  %v1128_v13 = vld [vmem:[#allocation2 + $0x10] sm:$0xf0]  ;;  %v1556_v16 = vld [vmem:[#allocation2 + $0xf4] sm:$0xf0]  ;;  %v1275_v20 = vor.u32 %v1561_v8, %v1272_v9 }
  0x26   :  { %195 = vmatpush.bf16.msra.mxu1 %v1063_v51  ;;  %v1160_v51 = vld [vmem:[#allocation2 + $0x50] sm:$0xf0]  ;;  %v1554_v17 = vld [vmem:[#allocation2 + $0xec] sm:$0xf]  ;;  %v1559_v22 = vld [vmem:[#allocation2 + $0x10c] sm:$0xf0]  ;;  %v1131_v28 = vor.u32 %v1525_v12, %v1128_v13  ;;  %v1247_v33 = vor.u32 %v1556_v16, %v1246_v14 }
  0x27   :  { %208 = vmatpush.bf16.msra.mxu2 %v1067_v53  ;;  %v1307_v53 = vor.u32 %v1569_v45, %v1304_v46  ;;  %v1163_v59 = vor.u32 %v1533_v50, %v1160_v51  ;;  %v1557_v23 = vld [vmem:[#allocation2 + $0x104] sm:$0xf]  ;;  %v1256_v25 = vld [vmem:[#allocation2 + $0x110] sm:$0xf0]  ;;  %v1374_v26 = vld [vmem:[#allocation2 + $0x1e8] sm:$0xf] }
  0x28   :  { %629 = vmatpush.bf16.msrb.mxu0 %v1303_v52  ;;  %v1586_v30 = vld [vmem:[#allocation2 + $0x1ec] sm:$0xf]  ;;  %v1376_v31 = vld [vmem:[#allocation2 + $0x1f8] sm:$0xf0]  ;;  %v1552_v36 = vld [vmem:[#allocation2 + $0xd4] sm:$0xf0]  ;;  %v1259_v40 = vor.u32 %v1557_v23, %v1256_v25 }
  0x29   :  { %617 = vmatpush.bf16.msra.mxu3 %v1159_v55  ;;  %v1550_v37 = vld [vmem:[#allocation2 + $0xcc] sm:$0xf]  ;;  %v1232_v38 = vld [vmem:[#allocation2 + $0xd8] sm:$0xf0]  ;;  %v1379_v42 = vor.u32 %v1586_v30, %v1376_v31  ;;  %v1214_v46 = vld [vmem:[#allocation2 + $0xa8] sm:$0xf] }
  0x2a   :  { %638 = vmatpush.bf16.msrb.mxu1 %v1243_v61  ;;  %v1531_v61 = vld [vmem:[#allocation2 + $0x2c] sm:$0xf0]  ;;  %v1235_v45 = vor.u32 %v1550_v37, %v1232_v38  ;;  %v1546_v48 = vld [vmem:[#allocation2 + $0xac] sm:$0xf]  ;;  %v1216_v50 = vld [vmem:[#allocation2 + $0xb8] sm:$0xf0] }
  0x2b   :  { %651 = vmatpush.bf16.msrb.mxu2 %v1371_v7  ;;  %v1143_v4 = vor.u32 %v1531_v61, %v1142_v60  ;;  %v1563_v7 = vld [vmem:[#allocation2 + $0x12c] sm:$0xf0]  ;;  %v1219_v51 = vor.u32 %v1546_v48, %v1216_v50  ;;  %v1358_v52 = vld [vmem:[#allocation2 + $0x1c8] sm:$0xf]  ;;  %v1582_v54 = vld [vmem:[#allocation2 + $0x1cc] sm:$0xf] }
  0x2c   :  { %630 = vmatpush.bf16.msrb.mxu0 %v1287_v1  ;;  %v1271_v19 = vor.u32 %v1563_v7, %v1270_v3  ;;  %v1360_v56 = vld [vmem:[#allocation2 + $0x1d8] sm:$0xf0]  ;;  %v1198_v58 = vld [vmem:[#allocation2 + $0x88] sm:$0xf]  ;;  %v1542_v60 = vld [vmem:[#allocation2 + $0x8c] sm:$0xf] }
  0x2d   :  { %618 = vmatpush.bf16.msra.mxu3 %v1143_v4  ;;  %v1363_v57 = vor.u32 %v1582_v54, %v1360_v56  ;;  %v1342_v0 = vld [vmem:[#allocation2 + $0x1a8] sm:$0xf]  ;;  %v1580_v1 = vld [vmem:[#allocation2 + $0x1b4] sm:$0xf0]  ;;  %v1344_v4 = vld [vmem:[#allocation2 + $0x1b8] sm:$0xf0] }
  0x2e   :  { %639 = vmatpush.bf16.msrb.mxu1 %v1227_v5  ;;  %v1126_v5 = vld [vmem:[#allocation2] sm:$0xf]  ;;  %v1343_v3 = vor.u32 %v1580_v1, %v1342_v0  ;;  %v1540_v7 = vld [vmem:[#allocation2 + $0x74] sm:$0xf0]  ;;  %v1538_v9 = vld [vmem:[#allocation2 + $0x6c] sm:$0xf] }
  0x2f   :  { %652 = vmatpush.bf16.msrb.mxu2 %v1355_v18  ;;  %v1248_v18 = vld [vmem:[#allocation2 + $0xf8] sm:$0xf0]  ;;  %v1127_v27 = vor.u32 %v1527_v6, %v1126_v5  ;;  %v1182_v6 = vld [vmem:[#allocation2 + $0x68] sm:$0xf]  ;;  %v1576_v13 = vld [vmem:[#allocation2 + $0x194] sm:$0xf0] }
  0x30   :  { %v1251_v34 = vor.u32 %v1554_v17, %v1248_v18  ;;  %631 = vmatpush.bf16.msrb.mxu0 %v1271_v19  ;;  %v1183_v8 = vor.u32 %v1540_v7, %v1182_v6  ;;  %v1326_v12 = vld [vmem:[#allocation2 + $0x188] sm:$0xf]  ;;  %v1574_v14 = vld [vmem:[#allocation2 + $0x18c] sm:$0xf]  ;;  %v1328_v16 = vld [vmem:[#allocation2 + $0x198] sm:$0xf0] }
  0x31   :  { %619 = vmatpush.bf16.msra.mxu3 %v1127_v27  ;;  %v1331_v17 = vor.u32 %v1574_v14, %v1328_v16  ;;  %v1166_v18 = vld [vmem:[#allocation2 + $0x48] sm:$0xf]  ;;  %v1536_v19 = vld [vmem:[#allocation2 + $0x54] sm:$0xf0]  ;;  %v1562_v50 = vld [vmem:[#allocation2 + $0x12c] sm:$0xf] }
  0x32   :  { %640 = vmatpush.bf16.msrb.mxu1 %v1211_v21  ;;  %v1254_v21 = vld [vmem:[#allocation2 + $0x100] sm:$0xf]  ;;  %v1572_v25 = vld [vmem:[#allocation2 + $0x174] sm:$0xf0]  ;;  %v1150_v30 = vld [vmem:[#allocation2 + $0x28] sm:$0xf] }
  0x33   :  { %653 = vmatpush.bf16.msrb.mxu2 %v1339_v29  ;;  %v1588_v29 = vld [vmem:[#allocation2 + $0x1f4] sm:$0xf0]  ;;  %v1255_v39 = vor.u32 %v1559_v22, %v1254_v21  ;;  %v1167_v21 = vor.u32 %v1536_v19, %v1166_v18  ;;  %v1168_v22 = vld [vmem:[#allocation2 + $0x58] sm:$0xf0]  ;;  %v1278_v48 = vld [vmem:[#allocation2 + $0x128] sm:$0xf] }
  0x34   :  { %v1532_v31 = vld [vmem:[#allocation2 + $0x34] sm:$0xf0]  ;;  %v1262_v54 = vld [vmem:[#allocation2 + $0x108] sm:$0xf]  ;;  %v1558_v56 = vld [vmem:[#allocation2 + $0x10c] sm:$0xf] }
  0x35   :  { %664 = vmatpush.bf16.msrb.mxu3 %v1247_v33  ;;  %632 = vmatpush.bf16.msrb.mxu0 %v1255_v39  ;;  %v1151_v33 = vor.u32 %v1532_v31, %v1150_v30  ;;  %v1566_v39 = vld [vmem:[#allocation2 + $0x14c] sm:$0xf]  ;;  %v1595_v7 = vld [vmem:[%s1959_s7 + $0x30] sm:$0xff]  ;;  %v1593_v14 = vld [vmem:[%s1959_s7 + $0x20] sm:$0xff]  ;;  %s1682_s26 = smov [#allocation5]   ;;  %s1045_s0 = sshll.u32 %s1961_s9, 4  ;;  %s1046_s0 = int_to_ptr.hbm [resolvable:$true] %s1045_s0 }
  0x36   :  { %641 = vmatpush.bf16.msrb.mxu1 %v1195_v35  ;;  %v1230_v35 = vld [vmem:[#allocation2 + $0xc8] sm:$0xf]  ;;  %v1592_v16 = vld [vmem:[%s1959_s7 + $0x18] sm:$0xff]  ;;  %v1591_v19 = vld [vmem:[%s1959_s7 + $0x10] sm:$0xff]  ;;  %s1043_s1 = sshll.u32 %s1682_s26, 4  ;;  %vm1036_vm2 = vcmask 523264   ;;  %s1044_s1 = int_to_ptr.vmem [resolvable:$true] %s1043_s1 }
  0x37   :  { %654 = vmatpush.bf16.msrb.mxu2 %v1323_v41  ;;  %v1375_v41 = vor.u32 %v1588_v29, %v1374_v26  ;;  %v1231_v44 = vor.u32 %v1552_v36, %v1230_v35  ;;  %v1570_v26 = vld [vmem:[#allocation2 + $0x16c] sm:$0xf]  ;;  %v1294_v35 = vld [vmem:[#allocation2 + $0x148] sm:$0xf]  ;;  %v1568_v36 = vld [vmem:[#allocation2 + $0x154] sm:$0xf0] }
  0x38   :  { %v1295_v38 = vor.u32 %v1568_v36, %v1294_v35  ;;  %v1612_v18 = vld [vmem:[%s1959_s7 + $0xb8] sm:$0xff]  ;;  %v1618_v30 = vld [vmem:[%s1959_s7 + $0xe8] sm:$0xff]  ;;  %v1597_v31 = vld [vmem:[%s1959_s7 + $0x40] sm:$0xff] }
  0x39   :  { %677 = vmatpush.bf16.msra.mxu0 %v1375_v41  ;;  %665 = vmatpush.bf16.msrb.mxu3 %v1231_v44  ;;  %v1134_v41 = vld [vmem:[#allocation2 + $0x8] sm:$0xf]  ;;  %v1526_v44 = vld [vmem:[#allocation2 + $0xc] sm:$0xf]  ;;  %v1616_v35 = vld [vmem:[%s1959_s7 + $0xd8] sm:$0xff] }
  0x3a   :  { %642 = vmatpush.bf16.msrb.mxu1 %v1179_v47  ;;  %v1548_v47 = vld [vmem:[#allocation2 + $0xb4] sm:$0xf0]  ;;  %v1606_v36 = vld [vmem:[%s1959_s7 + $0x88] sm:$0xff] }
  0x3b   :  { %655 = vmatpush.bf16.msrb.mxu2 %v1307_v53  ;;  %v1215_v49 = vor.u32 %v1548_v47, %v1214_v46  ;;  %v1584_v53 = vld [vmem:[#allocation2 + $0x1d4] sm:$0xf0] }
  0x3c   :  { %v1359_v55 = vor.u32 %v1584_v53, %v1358_v52  ;;  %v1280_v52 = vld [vmem:[#allocation2 + $0x138] sm:$0xf0] }
  0x3d   :  { %666 = vmatpush.bf16.msrb.mxu3 %v1215_v49  ;;  %v1564_v49 = vld [vmem:[#allocation2 + $0x134] sm:$0xf0]  ;;  %v1283_v53 = vor.u32 %v1562_v50, %v1280_v52 }
  0x3e   :  { %643 = vmatpush.bf16.msrb.mxu1 %v1163_v59  ;;  %v1544_v59 = vld [vmem:[#allocation2 + $0x94] sm:$0xf0]  ;;  %678 = vmatpush.bf16.msra.mxu0 %v1359_v55 }
  0x3f   :  { %656 = vmatpush.bf16.msrb.mxu2 %v1291_v2  ;;  %v1199_v61 = vor.u32 %v1544_v59, %v1198_v58  ;;  %v1578_v2 = vld [vmem:[#allocation2 + $0x1ac] sm:$0xf]  ;;  %v1560_v55 = vld [vmem:[#allocation2 + $0x114] sm:$0xf0]  ;;  %v1264_v58 = vld [vmem:[#allocation2 + $0x118] sm:$0xf0] }
  0x40   :  { %v1347_v5 = vor.u32 %v1578_v2, %v1344_v4  ;;  %v1267_v59 = vor.u32 %v1558_v56, %v1264_v58  ;;  %v1596_v2 = vld [vmem:[%s1959_s7 + $0x38] sm:$0xff] }
  0x41   :  { %667 = vmatpush.bf16.msrb.mxu3 %v1199_v61 }
  0x42   :  { %644 = vmatpush.bf16.msrb.mxu1 %v1147_v11  ;;  %679 = vmatpush.bf16.msra.mxu0 %v1343_v3 }
  0x43   :  { %657 = vmatpush.bf16.msrb.mxu2 %v1275_v20  ;;  %v1534_v20 = vld [vmem:[#allocation2 + $0x4c] sm:$0xf] }
  0x44   :  { %v1171_v23 = vor.u32 %v1534_v20, %v1168_v22  ;;  %v1600_v20 = vld [vmem:[%s1959_s7 + $0x58] sm:$0xff] }
  0x45   :  { %668 = vmatpush.bf16.msrb.mxu3 %v1183_v8  ;;  %v1620_v22 = vld [vmem:[%s1959_s7 + $0xf8] sm:$0xff] }
  0x46   :  { %645 = vmatpush.bf16.msrb.mxu1 %v1131_v28  ;;  %v1312_v28 = vld [vmem:[#allocation2 + $0x178] sm:$0xf0] }
  0x47   :  { %658 = vmatpush.bf16.msrb.mxu2 %v1259_v40  ;;  %v1315_v29 = vor.u32 %v1570_v26, %v1312_v28  ;;  %v1296_v40 = vld [vmem:[#allocation2 + $0x158] sm:$0xf0]  ;;  %v1619_v26 = vld [vmem:[%s1959_s7 + $0xf0] sm:$0xff]  ;;  %v1598_v28 = vld [vmem:[%s1959_s7 + $0x48] sm:$0xff] }
  0x49   :  { %669 = vmatpush.bf16.msrb.mxu3 %v1167_v21  ;;  %v1611_v21 = vld [vmem:[%s1959_s7 + $0xb0] sm:$0xff] }
  0x4d   :  { %670 = vmatpush.bf16.msrb.mxu3 %v1151_v33  ;;  %v1617_v33 = vld [vmem:[%s1959_s7 + $0xe0] sm:$0xff] }
  0x8a   :  { %v80_v10 = vpop.f32.mrf.mxu0 }
  0x8b   :  { %v81_v15 = vadd.f32 %v1625_v62, %v80_v10  ;;  %v1200_v62 = vld [vmem:[#allocation2 + $0x98] sm:$0xf0] }
  0x8c   :  { %v1203_v63 = vor.u32 %v1542_v60, %v1200_v62  ;;  %v1184_v10 = vld [vmem:[#allocation2 + $0x78] sm:$0xf0]  ;;  %v102_v60 = vld [vmem:[%s1956_s4] sm:$0x3] }
  0x8d   :  { %v84_v24 = vmax.f32 %v81_v15, 0.0  ;;  %v1187_v11 = vor.u32 %v1538_v9, %v1184_v10  ;;  %v1327_v15 = vor.u32 %v1576_v13, %v1326_v12  ;;  %v104_v61 = vperm.slane %v102_v60, 0  ;;  %v1604_v9 = vld [vmem:[%s1959_s7 + $0x78] sm:$0xff]  ;;  %v1603_v13 = vld [vmem:[%s1959_s7 + $0x70] sm:$0xff] }
  0x8e   :  { %v105_v1 = vperm.slane %v102_v60, 1 }
  0x8f   :  { %v85_v32 = vpack.c.bf16 %v84_v24, %v84_v24  ;;  %680 = vmatpush.bf16.msra.mxu0 %v1327_v15  ;;  %v1310_v24 = vld [vmem:[#allocation2 + $0x168] sm:$0xf] }
  0x90   :  { %v1311_v27 = vor.u32 %v1572_v25, %v1310_v24  ;;  %v1602_v15 = vld [vmem:[%s1959_s7 + $0x68] sm:$0xff]  ;;  %v1599_v24 = vld [vmem:[%s1959_s7 + $0x50] sm:$0xff] }
  0x91   :  { %196 = vmatmul.bf16.vlgmr.msra.gmra.mxu1 %v85_v32  ;;  %209 = vmatmul.bf16.vlgmr.msra.gmra.mxu2 %v85_v32  ;;  %v1530_v32 = vld [vmem:[#allocation2 + $0x2c] sm:$0xf] }
  0x92   :  { %v82_v43 = vpop.f32.mrf.mxu0  ;;  %690 = vmatpush.bf16.msra.mxu1 %v1251_v34  ;;  %703 = vmatpush.bf16.msra.mxu2 %v1379_v42  ;;  %v1152_v34 = vld [vmem:[#allocation2 + $0x38] sm:$0xf0]  ;;  %v1299_v42 = vor.u32 %v1566_v39, %v1296_v40  ;;  %v1610_v25 = vld [vmem:[%s1959_s7 + $0xa8] sm:$0xff]  ;;  %v1613_v40 = vld [vmem:[%s1959_s7 + $0xc0] sm:$0xff] }
  0x93   :  { %681 = vmatpush.bf16.msra.mxu0 %v1311_v27  ;;  %v1155_v37 = vor.u32 %v1530_v32, %v1152_v34  ;;  %v1528_v43 = vld [vmem:[#allocation2 + $0x14] sm:$0xf0]  ;;  %v1589_v27 = vld [vmem:[%s1959_s7] sm:$0xff]  ;;  %v1607_v34 = vld [vmem:[%s1959_s7 + $0x90] sm:$0xff] }
  0x94   :  { %v1135_v46 = vor.u32 %v1528_v43, %v1134_v41  ;;  %v1608_v32 = vld [vmem:[%s1959_s7 + $0x98] sm:$0xff]  ;;  %v1614_v39 = vld [vmem:[%s1959_s7 + $0xc8] sm:$0xff] }
  0x96   :  { %691 = vmatpush.bf16.msra.mxu1 %v1235_v45  ;;  %704 = vmatpush.bf16.msra.mxu2 %v1363_v57  ;;  %v1136_v45 = vld [vmem:[#allocation2 + $0x18] sm:$0xf0]  ;;  %v1263_v57 = vor.u32 %v1560_v55, %v1262_v54 }
  0x97   :  { %v1139_v47 = vor.u32 %v1526_v44, %v1136_v45  ;;  %682 = vmatpush.bf16.msra.mxu0 %v1295_v38  ;;  %671 = vmatpush.bf16.msrb.mxu3 %v1135_v46  ;;  %v1605_v38 = vld [vmem:[%s1959_s7 + $0x80] sm:$0xff] }
  0x9a   :  { %692 = vmatpush.bf16.msra.mxu1 %v1219_v51  ;;  %705 = vmatpush.bf16.msra.mxu2 %v1347_v5  ;;  %v1279_v51 = vor.u32 %v1564_v49, %v1278_v48 }
  0x9c   :  { %683 = vmatpush.bf16.msra.mxu0 %v1279_v51 }
  0x9e   :  { %693 = vmatpush.bf16.msra.mxu1 %v1203_v63  ;;  %706 = vmatpush.bf16.msra.mxu2 %v1331_v17  ;;  %v1601_v17 = vld [vmem:[%s1959_s7 + $0x60] sm:$0xff] }
  0xa0   :  { %684 = vmatpush.bf16.msra.mxu0 %v1263_v57 }
  0xa2   :  { %694 = vmatpush.bf16.msra.mxu1 %v1187_v11  ;;  %707 = vmatpush.bf16.msra.mxu2 %v1315_v29  ;;  %v1594_v11 = vld [vmem:[%s1959_s7 + $0x28] sm:$0xff]  ;;  %v1609_v29 = vld [vmem:[%s1959_s7 + $0xa0] sm:$0xff] }
  0xa6   :  { %695 = vmatpush.bf16.msra.mxu1 %v1171_v23  ;;  %708 = vmatpush.bf16.msra.mxu2 %v1299_v42  ;;  %v1590_v23 = vld [vmem:[%s1959_s7 + $0x8] sm:$0xff]  ;;  %v282_v42 = vld [vmem:[%s1958_s6] sm:$0xf] }
  0xa7   :  { %v284_v43 = vperm.slane %v282_v42, 0  ;;  %v285_v46 = vperm.slane %v282_v42, 1  ;;  %v286_v60 = vperm.slane %v282_v42, 2 }
  0xaa   :  { %696 = vmatpush.bf16.msra.mxu1 %v1155_v37  ;;  %709 = vmatpush.bf16.msra.mxu2 %v1283_v53  ;;  %v1615_v37 = vld [vmem:[%s1959_s7 + $0xd0] sm:$0xff] }
  0xae   :  { %697 = vmatpush.bf16.msra.mxu1 %v1139_v47  ;;  %710 = vmatpush.bf16.msra.mxu2 %v1267_v59 }
 0x10e   :  { %v197_v62 = vpop.f32.mrf.mxu1 }
 0x10f   :  { %v198_v63 = vadd.f32 %v197_v62, %v104_v61 }
 0x111   :  { %v214_v0 = vmax.f32 %v198_v63, 0.0 }
 0x113   :  { %v216_v3 = vpack.c.bf16 %v214_v0, %v214_v0  ;;  %v287_v0 = vperm.slane %v282_v42, 3 }
 0x114   :  { %v210_v4 = vpop.f32.mrf.mxu2 }
 0x115   :  { %v211_v5 = vadd.f32 %v210_v4, %v105_v1  ;;  %620 = vmatmul.bf16.vlgmr.msra.gmra.mxu3 %v216_v3  ;;  %646 = vmatmul.bf16.vlgmr.msrb.gmra.mxu1 %v216_v3 }
 0x116   :  { %v199_v6 = vpop.f32.mrf.mxu1  ;;  %984 = vmatpush.bf16.msra.mxu3 %v1596_v2  ;;  %1010 = vmatpush.bf16.msrb.mxu1 %v1612_v18  ;;  %v1626_v18 = vld [vmem:[%s1960_s8] ss:$0 sm:$0xff] }
 0x117   :  { %v215_v8 = vmax.f32 %v211_v5, 0.0 }
 0x119   :  { %v217_v10 = vpack.c.bf16 %v215_v8, %v215_v8 }
 0x11a   :  { %985 = vmatpush.bf16.msra.mxu3 %v1595_v7  ;;  %1011 = vmatpush.bf16.msrb.mxu1 %v1611_v21 }
 0x11b   :  { %633 = vmatmul.bf16.vlgmr.msrb.gmra.mxu0 %v217_v10  ;;  %659 = vmatmul.bf16.vlgmr.msrb.gmra.mxu2 %v217_v10 }
 0x11c   :  { %v212_v12 = vpop.f32.mrf.mxu2  ;;  %997 = vmatpush.bf16.msrb.mxu0 %v1604_v9  ;;  %1023 = vmatpush.bf16.msrb.mxu2 %v1620_v22 }
 0x11e   :  { %986 = vmatpush.bf16.msra.mxu3 %v1594_v11  ;;  %1012 = vmatpush.bf16.msrb.mxu1 %v1610_v25 }
 0x120   :  { %998 = vmatpush.bf16.msrb.mxu0 %v1603_v13  ;;  %1024 = vmatpush.bf16.msrb.mxu2 %v1619_v26 }
 0x122   :  { %987 = vmatpush.bf16.msra.mxu3 %v1593_v14  ;;  %1013 = vmatpush.bf16.msrb.mxu1 %v1609_v29 }
 0x124   :  { %999 = vmatpush.bf16.msrb.mxu0 %v1602_v15  ;;  %1025 = vmatpush.bf16.msrb.mxu2 %v1618_v30 }
 0x125   :  { %672 = vmatmul.bf16.vlgmr.msrb.gmra.mxu3 %v216_v3  ;;  %698 = vmatmul.bf16.vlgmr.msra.gmra.mxu1 %v216_v3 }
 0x126   :  { %988 = vmatpush.bf16.msra.mxu3 %v1592_v16  ;;  %1014 = vmatpush.bf16.msrb.mxu1 %v1608_v32 }
 0x128   :  { %1000 = vmatpush.bf16.msrb.mxu0 %v1601_v17  ;;  %1026 = vmatpush.bf16.msrb.mxu2 %v1617_v33 }
 0x12a   :  { %989 = vmatpush.bf16.msra.mxu3 %v1591_v19  ;;  %1015 = vmatpush.bf16.msrb.mxu1 %v1607_v34 }
 0x12b   :  { %685 = vmatmul.bf16.vlgmr.msra.gmra.mxu0 %v217_v10  ;;  %711 = vmatmul.bf16.vlgmr.msra.gmra.mxu2 %v217_v10 }
 0x12c   :  { %1001 = vmatpush.bf16.msrb.mxu0 %v1600_v20  ;;  %1027 = vmatpush.bf16.msrb.mxu2 %v1616_v35 }
 0x12e   :  { %990 = vmatpush.bf16.msra.mxu3 %v1590_v23  ;;  %1016 = vmatpush.bf16.msrb.mxu1 %v1606_v36 }
 0x130   :  { %1002 = vmatpush.bf16.msrb.mxu0 %v1599_v24  ;;  %1028 = vmatpush.bf16.msrb.mxu2 %v1615_v37 }
 0x132   :  { %991 = vmatpush.bf16.msra.mxu3 %v1589_v27  ;;  %1017 = vmatpush.bf16.msrb.mxu1 %v1605_v38 }
 0x134   :  { %1003 = vmatpush.bf16.msrb.mxu0 %v1598_v28  ;;  %1029 = vmatpush.bf16.msrb.mxu2 %v1614_v39 }
 0x138   :  { %1004 = vmatpush.bf16.msrb.mxu0 %v1597_v31  ;;  %1030 = vmatpush.bf16.msrb.mxu2 %v1613_v40 }
 0x192   :  { %v647_v41 = vpop.f32.mrf.mxu1 }
 0x193   :  { %v648_v50 = vadd.f32 %v647_v41, %v285_v46 }
 0x198   :  { %v621_v44 = vpop.f32.mrf.mxu3  ;;  %v634_v45 = vpop.f32.mrf.mxu0 }
 0x199   :  { %v622_v47 = vadd.f32 %v621_v44, %v284_v43 }
 0x19a   :  { %v649_v48 = vpop.f32.mrf.mxu1 }
 0x19b   :  { %v635_v49 = vadd.f32 %v634_v45, %v622_v47 }
 0x19d   :  { %v716_v51 = vmax.f32 %v635_v49, 0.0 }
 0x19e   :  { %v660_v52 = vpop.f32.mrf.mxu2 }
 0x19f   :  { %v720_v53 = vpack.c.bf16 %v716_v51, %v716_v51  ;;  %v661_v54 = vadd.f32 %v660_v52, %v648_v50 }
 0x1a0   :  { %v623_v55 = vpop.f32.mrf.mxu3  ;;  %v636_v56 = vpop.f32.mrf.mxu0 }
 0x1a1   :  { %v717_v57 = vmax.f32 %v661_v54, 0.0  ;;  %992 = vmatmul.bf16.vlgmr.msra.gmra.mxu3 %v720_v53 }
 0x1a2   :  { %v699_v58 = vpop.f32.mrf.mxu1 }
 0x1a3   :  { %v721_v59 = vpack.c.bf16 %v717_v57, %v717_v57  ;;  %v700_v4 = vadd.f32 %v699_v58, %v287_v0 }
 0x1a5   :  { %1005 = vmatmul.bf16.vlgmr.msrb.gmra.mxu0 %v721_v59 }
 0x1a6   :  { %v662_v61 = vpop.f32.mrf.mxu2 }
 0x1a8   :  { %v673_v62 = vpop.f32.mrf.mxu3  ;;  %v686_v63 = vpop.f32.mrf.mxu0 }
 0x1a9   :  { %v674_v1 = vadd.f32 %v673_v62, %v286_v60 }
 0x1aa   :  { %v701_v2 = vpop.f32.mrf.mxu1 }
 0x1ab   :  { %v687_v3 = vadd.f32 %v686_v63, %v674_v1 }
 0x1ad   :  { %v718_v5 = vmax.f32 %v687_v3, 0.0 }
 0x1ae   :  { %v712_v6 = vpop.f32.mrf.mxu2 }
 0x1af   :  { %v722_v7 = vpack.c.bf16 %v718_v5, %v718_v5  ;;  %v713_v8 = vadd.f32 %v712_v6, %v700_v4 }
 0x1b0   :  { %v675_v9 = vpop.f32.mrf.mxu3  ;;  %v688_v10 = vpop.f32.mrf.mxu0 }
 0x1b1   :  { %v719_v11 = vmax.f32 %v713_v8, 0.0  ;;  %1018 = vmatmul.bf16.vlgmr.msrb.gmra.mxu1 %v722_v7 }
 0x1b3   :  { %v723_v12 = vpack.c.bf16 %v719_v11, %v719_v11 }
 0x1b5   :  { %1031 = vmatmul.bf16.vlgmr.msrb.gmra.mxu2 %v723_v12 }
 0x1b6   :  { %v714_v13 = vpop.f32.mrf.mxu2 }
 0x222   :  { %v1006_v14 = vpop.f32.mrf.mxu0 }
 0x224   :  { %v993_v15 = vpop.f32.mrf.mxu3 }
 0x225   :  { %v994_v20 = vadd.f32 %v1626_v18, %v993_v15 }
 0x227   :  { %v1007_v21 = vadd.f32 %v1006_v14, %v994_v20 }
 0x22a   :  { %v1008_v16 = vpop.f32.mrf.mxu0 }
 0x22c   :  { %v995_v17 = vpop.f32.mrf.mxu3 }
 0x22e   :  { %v1019_v19 = vpop.f32.mrf.mxu1 }
 0x22f   :  { %v1020_v23 = vadd.f32 %v1019_v19, %v1007_v21 }
 0x236   :  { %v1021_v22 = vpop.f32.mrf.mxu1 }
 0x238   :  { %v1032_v24 = vpop.f32.mrf.mxu2 }
 0x239   :  { %v1033_v25 = vadd.f32 %v1032_v24, %v1020_v23 }
 0x23b   :  { %1037 = vst.msk [vmem:[#allocation5] sm:$0xff] %vm1036_vm2, %v1033_v25 }
 0x23c   :  { %1048 = dma.vmem_to_hbm [thread:$0]  %s1044_s1, 128, %s1046_s0, [#allocation4]  }
 0x240   :  { %v1034_v26 = vpop.f32.mrf.mxu2 }
 0x241   :  { %1677 = dma.done.wait [#allocation4], 128  }
 0x242   :  { %1678 = vsyncadd [#allocation4], 4294967168 }
 0x243   :  { %1053 = vsyncpa [#allocation3], 1 }
 0x244   :  { %1054 = vsyncpa [#allocation4], 1 }

</bundles_post_ra>
